<compile_context>
chip_gen: v7x
topology: tpu7x:2x2x1
jax: 0.10.0
libtpu: 0.0.40
codegen_flags: <defaults>
</compile_context>

<pallas_src>
import jax
import jax.numpy as jnp
from jax.experimental import pallas as pl
from jax.experimental.pallas import tpu as pltpu

IN_DIM = 90
OUT_DIM = 3

LANE = 128          # lane width; tb must be a multiple of this (out lane axis)
SUBLANE = 8
TB_MIN = 512        # smallest useful batch tile (overhead amortization floor)
TB_MAX = 8192       # v7x-safe cap; sweep 4096-16384 on v5e/v6e if desired
NUM_TILES_TARGET = 4  # aim for >=4 grid steps so v7x megacore + pipeline engage


def _round_up(v, m):
    return ((v + m - 1) // m) * m


def linear_kernel(x_ref, w_ref, b_ref, o_ref):
    # One batch tile per grid step: (TB, 90) @ (90, 3) + b, stored transposed.
    x = x_ref[...]                       # (TB, 90)   activations
    w = w_ref[...]                       # (90, 3)    invariant weights
    bt = b_ref[...]                      # (3, 1)     invariant bias (column)
    acc = jnp.dot(x, w, preferred_element_type=jnp.float32)   # (TB, 3) on MXU
    # Transpose the small (TB, 3) result (XLU — hidden under the x DMA) so the
    # store is lane-dense: (3, TB) with the batch along the 128-lane axis.
    o_ref[...] = (acc.T + bt).astype(o_ref.dtype)


def logistic_regression_forward(x, w, b, *, tb_max=TB_MAX):
    """x: (B, IN_DIM), w: (IN_DIM, OUT_DIM), b: (OUT_DIM,) -> (B, OUT_DIM).

    NOTE: `w` is the PyTorch weight already transposed once at parameter-load
    time ((out,in) -> (in,out)); do not transpose per forward call.
    """
    B = x.shape[0]
    b_col = b.reshape(OUT_DIM, 1)

    # --- batch tile selection -------------------------------------------------
    # Target >= NUM_TILES_TARGET grid steps, keep tb a multiple of 128 (lane
    # axis of the transposed output), never below TB_MIN, never above the
    # generation-safe cap, and never absurdly larger than B itself.
    tb = max(TB_MIN, _round_up(pl.cdiv(B, NUM_TILES_TARGET), LANE))
    tb = min(tb, max(LANE, _round_up(B, LANE)))
    tb = min(tb, tb_max)
    grid = (pl.cdiv(B, tb),)

    # --- explicit VMEM budget (from padded tile sizes, 2x headroom) -----------
    itemsize = jnp.dtype(x.dtype).itemsize
    x_bytes = 2 * tb * LANE * itemsize               # x tile, lane-padded 90->128
    o_bytes = 2 * SUBLANE * tb * 4                   # (3,tb) tile, sublane pad 3->8
    w_bytes = 2 * _round_up(IN_DIM, SUBLANE) * LANE * 4
    b_bytes = 2 * SUBLANE * LANE * 4
    vmem_limit = 2 * (x_bytes + o_bytes + w_bytes + b_bytes)
    vmem_limit = int(min(max(vmem_limit, 4 << 20), 100 << 20))

    # --- scheduler hint: pure HBM streaming, negligible flops ------------------
    cost = pl.CostEstimate(
        flops=2 * B * IN_DIM * OUT_DIM,
        transcendentals=0,
        bytes_accessed=(B * IN_DIM * itemsize            # read x
                        + B * OUT_DIM * 4                 # write out
                        + IN_DIM * OUT_DIM * 4            # read w
                        + OUT_DIM * 4),                   # read b
    )

    out_t = pl.pallas_call(
        linear_kernel,
        out_shape=jax.ShapeDtypeStruct((OUT_DIM, B), x.dtype),
        grid_spec=pltpu.PrefetchScalarGridSpec(
            num_scalar_prefetch=0,
            grid=grid,
            in_specs=[
                # x streams one batch tile per grid step (double-buffered).
                pl.BlockSpec((tb, IN_DIM), lambda i: (i, 0)),
                # W and b: constant index map -> invariant blocks, no re-DMA.
                pl.BlockSpec((IN_DIM, OUT_DIM), lambda i: (0, 0)),
                pl.BlockSpec((OUT_DIM, 1), lambda i: (0, 0)),
            ],
            # Lane-dense transposed output: batch on the 128-lane axis.
            out_specs=pl.BlockSpec((OUT_DIM, tb), lambda i: (0, i)),
        ),
        compiler_params=pltpu.CompilerParams(
            # Batch tiles are independent -> shard across TCs on v7x megacore.
            dimension_semantics=("parallel",),
            vmem_limit_bytes=vmem_limit,
        ),
        cost_estimate=cost,
    )(x, w, b_col)

    # Un-transpose the tiny (3, B) result outside the kernel.
    return out_t.T


if __name__ == "__main__":
    key = jax.random.PRNGKey(0)
    kx, kw, kb = jax.random.split(key, 3)

    batch = 8   # small demo batch; kernel is built for large-B streaming
    # Deterministic "parameters" (mimicking nn.Linear(90, 3) init shapes):
    #   PyTorch weight is (out, in) = (3, 90); we store its transpose (90, 3)
    #   once at parameter-load time.
    w = jax.random.uniform(kw, (IN_DIM, OUT_DIM), jnp.float32,
                           minval=-1.0, maxval=1.0) / jnp.sqrt(IN_DIM)
    b = jax.random.uniform(kb, (OUT_DIM,), jnp.float32,
                           minval=-1.0, maxval=1.0) / jnp.sqrt(IN_DIM)
    x = jax.random.normal(kx, (batch, IN_DIM), jnp.float32)

    out = logistic_regression_forward(x, w, b)
    jax.block_until_ready(out)

    # Reference check against plain JAX.
    ref = x @ w + b
    assert out.shape == (batch, OUT_DIM)
    assert jnp.allclose(out, ref, atol=1e-5, rtol=1e-5)

    # Exercise the multi-tile (grid > 1) path with a larger batch that is not a
    # multiple of the tile size, to validate streaming + ragged last tile +
    # the lane-dense transposed output path.
    big_batch = 3 * TB_MAX + 40
    xb = jax.random.normal(kx, (big_batch, IN_DIM), jnp.float32)
    out_big = logistic_regression_forward(xb, w, b)
    jax.block_until_ready(out_big)
    ref_big = xb @ w + b
    assert out_big.shape == (big_batch, OUT_DIM)
    assert jnp.allclose(out_big, ref_big, atol=1e-5, rtol=1e-5)

    print("KERNEL_OK")
</pallas_src>

<mosaic_0001>
module attributes {stable_mosaic.version = 11 : i64} {
  func.func @linear_kernel(%arg0: i32, %arg1: memref<128x90xf32, #tpu.memory_space<vmem>>, %arg2: memref<90x3xf32, #tpu.memory_space<vmem>>, %arg3: memref<3x1xf32, #tpu.memory_space<vmem>>, %arg4: memref<3x128xf32, #tpu.memory_space<vmem>>) attributes {dimension_semantics = [#tpu.dimension_semantics<parallel>], iteration_bounds = array<i64: 1>, scalar_prefetch = 0 : i64, scratch_operands = 0 : i64, tpu.core_type = #tpu.core_type<tc>, window_params = [{transform_indices = @transform_0, window_bounds = array<i64: 128, 90>}, {pipeline_mode = #tpu.pipeline_mode<synchronous>, transform_indices = @transform_1, window_bounds = array<i64: 90, 3>}, {pipeline_mode = #tpu.pipeline_mode<synchronous>, transform_indices = @transform_2, window_bounds = array<i64: 3, 1>}, {transform_indices = @transform_3, window_bounds = array<i64: 3, 128>}]} {
    %c0 = arith.constant 0 : index
    %c0_0 = arith.constant 0 : index
    %0 = vector.load %arg1[%c0, %c0_0] : memref<128x90xf32, #tpu.memory_space<vmem>>, vector<128x90xf32>
    %c0_1 = arith.constant 0 : index
    %c0_2 = arith.constant 0 : index
    %1 = vector.load %arg2[%c0_1, %c0_2] : memref<90x3xf32, #tpu.memory_space<vmem>>, vector<90x3xf32>
    %c0_3 = arith.constant 0 : index
    %c0_4 = arith.constant 0 : index
    %2 = vector.load %arg3[%c0_3, %c0_4] : memref<3x1xf32, #tpu.memory_space<vmem>>, vector<3x1xf32>
    %cst = arith.constant dense<0.000000e+00> : vector<128x3xf32>
    %3 = tpu.matmul %0, %1, %cst {dimension_numbers = #tpu.dot_dimension_numbers<[1], [0], [0], [1], [0, 0, 1, 1], [], []>} : vector<128x90xf32>, vector<90x3xf32>, vector<128x3xf32> -> vector<128x3xf32>
    %4 = tpu.transpose %3, [1, 0] : vector<128x3xf32> -> vector<3x128xf32>
    %5 = vector.broadcast %2 : vector<3x1xf32> to vector<3x128xf32>
    %6 = arith.addf %4, %5 : vector<3x128xf32>
    %c0_5 = arith.constant 0 : index
    %c0_6 = arith.constant 0 : index
    %7 = vector.load %arg4[%c0_5, %c0_6] : memref<3x128xf32, #tpu.memory_space<vmem>>, vector<3x128xf32>
    tpu.vector_store %arg4[%c0_5, %c0_6], %6 {strides = array<i32>} : memref<3x128xf32, #tpu.memory_space<vmem>>, vector<3x128xf32>,
    return
  }
  func.func @transform_0(%arg0: i32) -> (i32, i32) {
    %c0_i32 = arith.constant 0 : i32
    %c0_i32_0 = arith.constant 0 : i32
    return %arg0, %c0_i32 : i32, i32
  }
  func.func @transform_1(%arg0: i32) -> (i32, i32) {
    %c0_i32 = arith.constant 0 : i32
    %c0_i32_0 = arith.constant 0 : i32
    %c0_i32_1 = arith.constant 0 : i32
    return %c0_i32, %c0_i32_0 : i32, i32
  }
  func.func @transform_2(%arg0: i32) -> (i32, i32) {
    %c0_i32 = arith.constant 0 : i32
    %c0_i32_0 = arith.constant 0 : i32
    %c0_i32_1 = arith.constant 0 : i32
    return %c0_i32, %c0_i32_0 : i32, i32
  }
  func.func @transform_3(%arg0: i32) -> (i32, i32) {
    %c0_i32 = arith.constant 0 : i32
    %c0_i32_0 = arith.constant 0 : i32
    return %c0_i32, %arg0 : i32, i32
  }
}

</mosaic_0001>

<bundles_post_ra>
// kernel: tpu_custom_call.1
= control target key start
LH: loop header
LB: loop body
LE: loop exit
PB: predicated region body
PF: predicated region fallthrough
CT: control target
= control target key end

     0   :  { %vm44_vm0 = vcmask 736256   ;;  %v454_v8 = vmov 0   ;;  %s592_s0 = inlined_call_operand.vmem [shape: f32[8,90], index: 0, kind: input, shape index: {}]   ;;  %s593_s1 = inlined_call_operand.vmem [shape: f32[90,3], index: 1, kind: input, shape index: {}]   ;;  %s594_s2 = inlined_call_operand.vmem [shape: f32[3,1], index: 2, kind: input, shape index: {}]   ;;  %s595_s3 = inlined_call_operand.hbm [shape: f32[3,8], index: 3, kind: output, shape index: {}]  }
   0x1   :  { %v31_v0 = vld [vmem:[%s593_s1] sm:$0xff]  ;;  %v32_v1 = vld [vmem:[%s593_s1 + $0x8] sm:$0xff]  ;;  %v33_v2 = vld [vmem:[%s593_s1 + $0x10] sm:$0xff]  ;;  %429 = vset.pattern.permute.xlu0 %v454_v8 }
   0x2   :  { %v388_v3 = vpack.c.bf16 %v32_v1, %v31_v0  ;;  %v34_v4 = vld [vmem:[%s593_s1 + $0x18] sm:$0xff]  ;;  %v35_v6 = vld [vmem:[%s593_s1 + $0x20] sm:$0xff]  ;;  %v36_v7 = vld [vmem:[%s593_s1 + $0x28] sm:$0xff] }
   0x3   :  { %v392_v5 = vpack.c.bf16 %v34_v4, %v33_v2  ;;  %v15_v9 = vld [vmem:[%s592_s0] sm:$0xff]  ;;  %v396_v10 = vpack.c.bf16 %v36_v7, %v35_v6  ;;  %v37_v11 = vld [vmem:[%s593_s1 + $0x30] sm:$0xff]  ;;  %v38_v12 = vld [vmem:[%s593_s1 + $0x38] sm:$0xff] }
   0x4   :  { %389 = vmatprep.subr.bf16.mxu0 %v388_v3  ;;  %414 = vmatprep.subr.bf16.mxu1 %v388_v3  ;;  %v23_v13 = vld [vmem:[%s592_s0 + $0x40] sm:$0xff]  ;;  %v400_v14 = vpack.c.bf16 %v38_v12, %v37_v11  ;;  %v40_v17 = vld [vmem:[%s593_s1 + $0x48] sm:$0xff] }
   0x5   :  { %391 = vmatpush3.bf16.msra.mxu0 %v388_v3  ;;  %420 = vmatpush3.bf16.msra.mxu1 %v388_v3  ;;  %v43_v15 = vld [vmem:[%s594_s2] sm:$0x7] }
   0x6   :  { %393 = vmatprep.subr.bf16.mxu0 %v392_v5  ;;  %364 = vmatprep.mubr.msk.f32.mxu0 %vm44_vm0, %v15_v9  ;;  %v39_v16 = vld [vmem:[%s593_s1 + $0x40] sm:$0xff] }
   0x7   :  { %415 = vmatprep.subr.bf16.mxu1 %v392_v5  ;;  %376 = vmatprep.mubr.msk.f32.mxu1 %vm44_vm0, %v23_v13 }
   0x8   :  { %276 = vperm.xlu0 %429, %v43_v15  }
   0x9   :  { %395 = vmatpush3.bf16.msra.mxu0 %v392_v5  ;;  %421 = vmatpush3.bf16.msra.mxu1 %v392_v5 }
   0xa   :  { %397 = vmatprep.subr.bf16.mxu0 %v396_v10  ;;  %416 = vmatprep.subr.bf16.mxu1 %v396_v10 }
   0xb   :  { %8 = vsyncpa [#allocation3], 0  ;;  %v404_v18 = vpack.c.bf16 %v40_v17, %v39_v16  ;;  %v41_v19 = vld [vmem:[%s593_s1 + $0x50] sm:$0xff]  ;;  %v42_v20 = vld [vmem:[%s593_s1 + $0x58] sm:$0x3]  ;;  %vm93_vm1 = vcmask 1041408  }
   0xc   :  { %v408_v21 = vpack.c.bf16 %v42_v20, %v41_v19  ;;  %vm455_vm2 = vmmov 1   ;;  %v16_v22 = vld [vmem:[%s592_s0 + $0x8] sm:$0xff]  ;;  %v17_v24 = vld [vmem:[%s592_s0 + $0x10] sm:$0xff]  ;;  %v18_v26 = vld [vmem:[%s592_s0 + $0x18] sm:$0xff] }
   0xd   :  { %399 = vmatpush3.bf16.msra.mxu0 %v396_v10  ;;  %422 = vmatpush3.bf16.msra.mxu1 %v396_v10  ;;  %vm409_vm3 = vmpackc.low %vm93_vm1, %vm455_vm2  ;;  %v24_v23 = vld [vmem:[%s592_s0 + $0x48] sm:$0xff]  ;;  %v25_v25 = vld [vmem:[%s592_s0 + $0x50] sm:$0xff] }
   0xe   :  { %401 = vmatprep.subr.bf16.mxu0 %v400_v14  ;;  %417 = vmatprep.subr.bf16.mxu1 %v400_v14  ;;  %v26_v27 = vld [vmem:[%s592_s0 + $0x58] sm:$0xff]  ;;  %v19_v28 = vld [vmem:[%s592_s0 + $0x20] sm:$0xff]  ;;  %v20_v30 = vld [vmem:[%s592_s0 + $0x28] sm:$0xff] }
   0xf   :  { %v27_v29 = vld [vmem:[%s592_s0 + $0x60] sm:$0xff]  ;;  %v28_v31 = vld [vmem:[%s592_s0 + $0x68] sm:$0xff]  ;;  %v21_v32 = vld [vmem:[%s592_s0 + $0x30] sm:$0xff] }
  0x10   :  { %v29_v33 = vld [vmem:[%s592_s0 + $0x70] sm:$0xff]  ;;  %v22_v34 = vld [vmem:[%s592_s0 + $0x38] sm:$0xff] }
  0x11   :  { %403 = vmatpush3.bf16.msra.mxu0 %v400_v14  ;;  %423 = vmatpush3.bf16.msra.mxu1 %v400_v14  ;;  %v30_v35 = vld [vmem:[%s592_s0 + $0x78] sm:$0xff]  ;;  %s456_s0 = smov [#allocation2]  }
  0x12   :  { %405 = vmatprep.subr.bf16.mxu0 %v404_v18  ;;  %418 = vmatprep.subr.bf16.mxu1 %v404_v18  ;;  %s287_s13 = sshll.u32 %s456_s0, 4  ;;  %s288_s13 = int_to_ptr.vmem [resolvable:$true] %s287_s13 }
  0x13   :  { %s430_s14 = scalar_lea.vmem %s288_s13, 64  ;;  %p435_p1 = scmp.lt.s32.totalorder %s288_s13, %s288_s13 }
  0x14   :  { %p431_p0 = scmp.ne.s32.totalorder %s288_s13, %s430_s14  ;;  %p436_p2 = scmp.lt.s32.totalorder %s430_s14, %s430_s14 }
  0x15   :  { %407 = vmatpush3.bf16.msra.mxu0 %v404_v18  ;;  %424 = vmatpush3.bf16.msra.mxu1 %v404_v18 }
  0x16   :  { %410 = vmatprep.subr.msk.bf16.mxu0 %vm409_vm3, %v408_v21  ;;  %419 = vmatprep.subr.msk.bf16.mxu1 %vm409_vm3, %v408_v21  ;;  %p437_p3 = por %p436_p2, %p435_p1 }
  0x18   :  { %p438_p4 = pnand %p437_p3, %p431_p0 }
  0x19   :  { %413 = vmatpush3.bf16.msk.msra.mxu0 %vm409_vm3, %v408_v21  ;;  %425 = vmatpush3.bf16.msk.msra.mxu1 %vm409_vm3, %v408_v21 }
  0x1c   :  { %365 = vmatmul.mubr.msk.f32.vlgmr.msra.gmra.mrb[0].mxu0 %vm44_vm0, %v16_v22  ;;  %377 = vmatmul.mubr.msk.f32.vlgmr.msra.gmra.mrb[0].mxu1 %vm44_vm0, %v24_v23 }
  0x1d   :  { %367 = vmatprep.mubr.msk.f32.mxu0 %vm44_vm0, %v17_v24  ;;  %379 = vmatprep.mubr.msk.f32.mxu1 %vm44_vm0, %v25_v25 }
  0x20   :  { %368 = vmatmul.mubr.msk.f32.gmra.mrb[2].mxu0 %vm44_vm0, %v18_v26  ;;  %380 = vmatmul.mubr.msk.f32.gmra.mrb[2].mxu1 %vm44_vm0, %v26_v27 }
  0x21   :  { %370 = vmatprep.mubr.msk.f32.mxu0 %vm44_vm0, %v19_v28  ;;  %382 = vmatprep.mubr.msk.f32.mxu1 %vm44_vm0, %v27_v29 }
  0x24   :  { %371 = vmatmul.mubr.msk.f32.gmra.mrb[4].mxu0 %vm44_vm0, %v20_v30  ;;  %383 = vmatmul.mubr.msk.f32.gmra.mrb[4].mxu1 %vm44_vm0, %v28_v31 }
  0x25   :  { %373 = vmatprep.mubr.msk.f32.mxu0 %vm44_vm0, %v21_v32  ;;  %385 = vmatprep.mubr.msk.f32.mxu1 %vm44_vm0, %v29_v33 }
  0x28   :  { %374 = vmatmul.mubr.msk.f32.gmra.mrb[6].mxu0 %vm44_vm0, %v22_v34  ;;  %386 = vmatmul.mubr.msk.f32.gmra.mrb[6].mxu1 %vm44_vm0, %v30_v35 }
  0x87   :  { %v277_v52 = vpop.permute.xlu0 %276 }
  0xef   :  { %v366_v36 = vpop.f32.mrb[0].mxu0  ;;  %v378_v37 = vpop.f32.mrb[0].mxu1 }
  0xf0   :  { %v163_v38 = vpop.f32.mrb[1].mxu0  ;;  %v203_v39 = vpop.f32.mrb[1].mxu1 }
  0xf1   :  { %242 = vxpose.xlu0.b32.start [1/16] (narrow) %v163_v38, 8 }
  0xf3   :  { %v369_v40 = vpop.f32.mrb[2].mxu0  ;;  %v381_v41 = vpop.f32.mrb[2].mxu1 }
  0xf4   :  { %v173_v42 = vpop.f32.mrb[3].mxu0  ;;  %v213_v43 = vpop.f32.mrb[3].mxu1 }
  0xf5   :  { %243 = vxpose.xlu0.b32.cont [2/16] (narrow) %v366_v36, 8 }
  0xf7   :  { %v372_v44 = vpop.f32.mrb[4].mxu0  ;;  %v384_v45 = vpop.f32.mrb[4].mxu1 }
  0xf8   :  { %v183_v46 = vpop.f32.mrb[5].mxu0  ;;  %v223_v47 = vpop.f32.mrb[5].mxu1 }
  0xf9   :  { %244 = vxpose.xlu0.b32.cont [3/16] (narrow) %v173_v42, 8 }
  0xfb   :  { %v375_v48 = vpop.f32.mrb[6].mxu0  ;;  %v387_v49 = vpop.f32.mrb[6].mxu1 }
  0xfc   :  { %v193_v50 = vpop.f32.mrb[7].mxu0  ;;  %v233_v51 = vpop.f32.mrb[7].mxu1 }
  0xfd   :  { %245 = vxpose.xlu0.b32.cont [4/16] (narrow) %v369_v40, 8 }
 0x101   :  { %246 = vxpose.xlu0.b32.cont [5/16] (narrow) %v183_v46, 8 }
 0x105   :  { %247 = vxpose.xlu0.b32.cont [6/16] (narrow) %v372_v44, 8 }
 0x109   :  { %248 = vxpose.xlu0.b32.cont [7/16] (narrow) %v193_v50, 8 }
 0x10d   :  { %249 = vxpose.xlu0.b32.cont [8/16] (narrow) %v375_v48, 8 }
 0x111   :  { %250 = vxpose.xlu0.b32.cont [9/16] (narrow) %v203_v39, 8 }
 0x115   :  { %251 = vxpose.xlu0.b32.cont [10/16] (narrow) %v378_v37, 8 }
 0x119   :  { %252 = vxpose.xlu0.b32.cont [11/16] (narrow) %v213_v43, 8 }
 0x11d   :  { %253 = vxpose.xlu0.b32.cont [12/16] (narrow) %v381_v41, 8 }
 0x121   :  { %254 = vxpose.xlu0.b32.cont [13/16] (narrow) %v223_v47, 8 }
 0x125   :  { %255 = vxpose.xlu0.b32.cont [14/16] (narrow) %v384_v45, 8 }
 0x129   :  { %256 = vxpose.xlu0.b32.cont [15/16] (narrow) %v233_v51, 8 }
 0x12d   :  { %257 = vxpose.xlu0.b32.end [16/16] (narrow) %v387_v49, 8 }
 0x171   :  { %v258_v53 = vpop.trf.xlu0 }
 0x172   :  { %v279_v54 = vadd.f32 %v277_v52, %v258_v53 }
 0x174   :  { %280 = vst [vmem:[#allocation2] sm:$0x7] %v279_v54 }
 0x175   :  { %441 = shalt.err (!%p438_p4)
}
 0x176   :  { %s442_s1 = scalar_lea.hbm %s595_s3, 64 }
 0x177   :  { %p443_p5 = scmp.ne.s32.totalorder %s595_s3, %s442_s1  ;;  %p446_p6 = scmp.lt.u32.totalorder %s442_s1, %s595_s3 }
 0x179   :  { %p448_p7 = pnand %p446_p6, %p443_p5 }
 0x17b   :  { %451 = shalt.err (!%p448_p7)
}
 0x17c   :  { %290 = dma.vmem_to_hbm [thread:$0]  %s288_s13, 64, %s595_s3, [#allocation3]  }
 0x17d   :  { %452 = dma.done.wait [#allocation3], 64  }
 0x17e   :  { %453 = vsyncadd [#allocation3], 4294967232 }
 0x17f   :  { %294 = vsyncpa [#allocation3], 1 }

</bundles_post_ra>
